<compile_context>
chip_gen: v6e
topology: v6e:2x2x1
jax: 0.10.0
libtpu: 0.0.40
codegen_flags: <defaults>
</compile_context>

<pallas_src>
import jax
import jax.numpy as jnp
from jax.experimental import pallas as pl
from jax.experimental.pallas import tpu as pltpu


def _round_up(n, m):
    return ((n + m - 1) // m) * m


def householder_flow_kernel(x_ref, v_ref, wt_ref, b_ref, x_out_ref, v_out_ref):
    """One fused Householder-flow step on a (TM, D) batch tile, all in VMEM.

    Matches the torch module exactly:
        v_new = v @ W^T + b                       (nn.Linear)
        H     = I - 2 * (v_new v_new^T) / ||v_new||^2
        x_new = H @ x  ==  x - (2 * <v_new, x> / ||v_new||^2) * v_new

    wt_ref holds W^T (pre-transposed once in the wrapper, by XLA, outside the
    kernel), so the MXU consumes the resident weight with the standard
    contraction -- no in-kernel transpose/relayout per grid step.
    """
    x = x_ref[...]                      # (TM, D) f32
    v = v_ref[...]                      # (TM, D) f32
    wt = wt_ref[...]                    # (D, D)  = W^T, f32 or bf16
    b = b_ref[...]                      # (1, D)  f32

    v_new = jnp.dot(v.astype(wt.dtype), wt,
                    preferred_element_type=jnp.float32) + b    # (TM, D) f32

    # Per-row reductions (XLU): ||v_new||^2 and <v_new, x>.
    v_sqr = jnp.sum(v_new * v_new, axis=1, keepdims=True)      # (TM, 1)
    v_dot_x = jnp.sum(v_new * x, axis=1, keepdims=True)        # (TM, 1)

    # Clamp avoids 0 * inf = NaN on zero-padded batch rows (real rows below
    # float32-tiny would be inf/NaN in the torch reference anyway).
    v_sqr = jnp.maximum(v_sqr, jnp.float32(jnp.finfo(jnp.float32).tiny))

    # Reflection coefficient on the (TM, 1) column only: one reciprocal per
    # row instead of a full (TM, D) VPU divide.  approx=False keeps exact
    # agreement with the reference at 1e-5 tolerance.
    coef = 2.0 * v_dot_x * pl.reciprocal(v_sqr, approx=False)  # (TM, 1)
    x_new = x - coef * v_new                                   # (TM, D)

    x_out_ref[...] = x_new.astype(x_out_ref.dtype)
    v_out_ref[...] = v_new.astype(v_out_ref.dtype)


def _pad2d(a, rows, cols):
    pr, pc = rows - a.shape[0], cols - a.shape[1]
    if pr == 0 and pc == 0:
        return a
    return jnp.pad(a, ((0, pr), (0, pc)))


def _single_buffered_spec(block_shape, index_map):
    """Constant-index (grid-resident) block: one VMEM buffer is enough."""
    try:
        return pl.BlockSpec(block_shape, index_map, pipeline_mode=pl.Buffered(1))
    except TypeError:  # older JAX without pipeline_mode kwarg
        return pl.BlockSpec(block_shape, index_map)


def householder_flow(x, v, w, b, *, tm_max=512, use_bf16_matmul=False,
                     donate_inputs=False, return_padded=False):
    """Returns (x_transformed, v_transformed, log_det_jacobian=0).

    x, v: (B, D); w: (D, D) torch-Linear weight; b: (D,) bias.
    use_bf16_matmul: feed the MXU in bf16 (f32 accumulation) -- faster for wide
        D, but may not hold 1e-5 tolerance for large D.
    donate_inputs: alias the (padded) x/v input buffers to the outputs.
    return_padded: return the padded (b_pad, d_pad) outputs without slicing,
        so a flow stack pads once at entry and slices once at the end.
    """
    B, D = x.shape

    # Lane-dense feature width (multiple of 128) and sublane-aligned batch.
    d_pad = _round_up(max(D, 1), 128)
    b_al = _round_up(max(B, 1), 8)

    # ---- generation-aware VMEM budget --------------------------------------
    try:
        vmem_cap = int(pltpu.get_tpu_info().vmem_capacity_bytes)
    except Exception:
        vmem_cap = 64 * 1024 * 1024          # conservative fallback (v7x per-TC)

    w_bytes = 2 if use_bf16_matmul else 4
    resident = d_pad * d_pad * w_bytes + d_pad * 4   # single-buffered W^T + bias
    per_row = 4 * 2 * d_pad * 4                      # x, v, x_out, v_out double-buffered
    usable = int(0.70 * vmem_cap)

    tm_budget = (usable - resident) // per_row
    if tm_budget < 8:
        # TODO(synk): when W^T alone blows the VMEM budget (d_pad >~ 2800 f32 on
        # v7x), tile W's rows with a second grid axis and accumulate
        # v_sqr / v_dot_x before the reflection update instead of keeping W resident.
        tm_budget = 8
    tm_budget = max(8, (tm_budget // 8) * 8)

    tm = min(tm_max, tm_budget)
    if b_al <= tm:
        if b_al >= 16:
            # Give the "parallel" batch axis >=2 grid points so megacore
            # (v7x: 2 TensorCores) actually gets work to shard.
            tm = min(tm, _round_up(b_al // 2, 8))
        else:
            tm = b_al
    b_pad = _round_up(b_al, tm)
    grid = (b_pad // tm,)

    # Zero-padding is exact for this op: padded feature columns of v_new are 0
    # (zero weight rows/cols + zero bias) so they contribute nothing to
    # v_sqr / v_dot_x, and padded batch rows are sliced away (coef clamped to 0).
    x_p = _pad2d(x.astype(jnp.float32), b_pad, d_pad)
    v_p = _pad2d(v.astype(jnp.float32), b_pad, d_pad)
    wt = jnp.transpose(w).astype(jnp.bfloat16 if use_bf16_matmul else jnp.float32)
    wt_p = _pad2d(wt, d_pad, d_pad)      # one-time XLA transpose, outside the kernel
    b_p = _pad2d(b.reshape(1, D).astype(jnp.float32), 1, d_pad)

    # VMEM: single-buffered W^T + bias, double-buffered (tm, d_pad) tiles for
    # x, v, x_out, v_out; 25% headroom, capped below physical VMEM.
    vmem_bytes = resident + tm * per_row
    vmem_limit = int(min(max(1.25 * vmem_bytes, 32 * 1024 * 1024), 0.90 * vmem_cap))

    call_kwargs = {}
    if donate_inputs:
        call_kwargs["input_output_aliases"] = {0: 0, 1: 1}

    x_out, v_out = pl.pallas_call(
        householder_flow_kernel,
        out_shape=(
            jax.ShapeDtypeStruct((b_pad, d_pad), jnp.float32),
            jax.ShapeDtypeStruct((b_pad, d_pad), jnp.float32),
        ),
        grid_spec=pltpu.PrefetchScalarGridSpec(
            num_scalar_prefetch=0,
            grid=grid,
            in_specs=[
                pl.BlockSpec((tm, d_pad), lambda i: (i, 0)),            # x tile
                pl.BlockSpec((tm, d_pad), lambda i: (i, 0)),            # v tile
                _single_buffered_spec((d_pad, d_pad), lambda i: (0, 0)),  # W^T (resident)
                _single_buffered_spec((1, d_pad), lambda i: (0, 0)),      # bias
            ],
            out_specs=(
                pl.BlockSpec((tm, d_pad), lambda i: (i, 0)),
                pl.BlockSpec((tm, d_pad), lambda i: (i, 0)),
            ),
        ),
        compiler_params=pltpu.CompilerParams(
            dimension_semantics=("parallel",),   # batch tiles shard across TCs (v7x)
            vmem_limit_bytes=vmem_limit,
        ),
        **call_kwargs,
    )(x_p, v_p, wt_p, b_p)

    # log-determinant of a Householder reflection's Jacobian is 0.
    if return_padded:
        return x_out, v_out, 0
    return x_out[:B, :D], v_out[:B, :D], 0


if __name__ == "__main__":
    B, D = 2, 32  # small shapes consistent with the module's (B x D) inputs

    key = jax.random.PRNGKey(0)
    kx, kv, kw, kb = jax.random.split(key, 4)

    x = jax.random.normal(kx, (B, D), dtype=jnp.float32)
    v = jax.random.normal(kv, (B, D), dtype=jnp.float32)

    # Deterministic nn.Linear(dim, dim) parameters (uniform(-1/sqrt(D), 1/sqrt(D)))
    bound = 1.0 / jnp.sqrt(jnp.float32(D))
    w = jax.random.uniform(kw, (D, D), dtype=jnp.float32, minval=-bound, maxval=bound)
    b = jax.random.uniform(kb, (D,), dtype=jnp.float32, minval=-bound, maxval=bound)

    x_out, v_out, logdet = householder_flow(x, v, w, b)
    jax.block_until_ready((x_out, v_out))

    # Pure-JAX reference mirroring the torch code (explicit H construction)
    v_ref = v @ w.T + b
    outer = v_ref[:, :, None] * v_ref[:, None, :]
    v_sqr = jnp.sum(v_ref * v_ref, axis=1)
    H = jnp.eye(D) - 2.0 * outer / v_sqr[:, None, None]
    x_ref = jnp.sum(H * x[:, None, :], axis=2)

    assert jnp.allclose(x_out, x_ref, atol=1e-5, rtol=1e-5)
    assert jnp.allclose(v_out, v_ref, atol=1e-5, rtol=1e-5)
    assert logdet == 0

    # Also exercise a multi-tile grid (megacore split + zero-padded batch rows).
    B2 = 20
    x2 = jax.random.normal(kx, (B2, D), dtype=jnp.float32)
    v2 = jax.random.normal(kv, (B2, D), dtype=jnp.float32)
    x2_out, v2_out, _ = householder_flow(x2, v2, w, b)
    jax.block_until_ready((x2_out, v2_out))
    v2_ref = v2 @ w.T + b
    coef2 = (2.0 * jnp.sum(v2_ref * x2, axis=1, keepdims=True)
             / jnp.sum(v2_ref * v2_ref, axis=1, keepdims=True))
    x2_ref = x2 - coef2 * v2_ref
    assert jnp.allclose(x2_out, x2_ref, atol=1e-5, rtol=1e-5)
    assert jnp.allclose(v2_out, v2_ref, atol=1e-5, rtol=1e-5)

    print("KERNEL_OK")
</pallas_src>

<mosaic_0001>
module attributes {stable_mosaic.version = 11 : i64} {
  func.func @householder_flow_kernel(%arg0: i32, %arg1: memref<8x128xf32, #tpu.memory_space<vmem>>, %arg2: memref<8x128xf32, #tpu.memory_space<vmem>>, %arg3: memref<128x128xf32, #tpu.memory_space<vmem>>, %arg4: memref<1x128xf32, #tpu.memory_space<vmem>>, %arg5: memref<8x128xf32, #tpu.memory_space<vmem>>, %arg6: memref<8x128xf32, #tpu.memory_space<vmem>>) attributes {dimension_semantics = [#tpu.dimension_semantics<parallel>], iteration_bounds = array<i64: 1>, scalar_prefetch = 0 : i64, scratch_operands = 0 : i64, tpu.core_type = #tpu.core_type<tc>, window_params = [{transform_indices = @transform_0, window_bounds = array<i64: 8, 128>}, {transform_indices = @transform_1, window_bounds = array<i64: 8, 128>}, {pipeline_mode = #tpu.pipeline_mode<synchronous>, transform_indices = @transform_2, window_bounds = array<i64: 128, 128>}, {pipeline_mode = #tpu.pipeline_mode<synchronous>, transform_indices = @transform_3, window_bounds = array<i64: 1, 128>}, {transform_indices = @transform_4, window_bounds = array<i64: 8, 128>}, {transform_indices = @transform_5, window_bounds = array<i64: 8, 128>}]} {
    %c0 = arith.constant 0 : index
    %c0_0 = arith.constant 0 : index
    %0 = vector.load %arg1[%c0, %c0_0] : memref<8x128xf32, #tpu.memory_space<vmem>>, vector<8x128xf32>
    %c0_1 = arith.constant 0 : index
    %c0_2 = arith.constant 0 : index
    %1 = vector.load %arg2[%c0_1, %c0_2] : memref<8x128xf32, #tpu.memory_space<vmem>>, vector<8x128xf32>
    %c0_3 = arith.constant 0 : index
    %c0_4 = arith.constant 0 : index
    %2 = vector.load %arg3[%c0_3, %c0_4] : memref<128x128xf32, #tpu.memory_space<vmem>>, vector<128x128xf32>
    %c0_5 = arith.constant 0 : index
    %c0_6 = arith.constant 0 : index
    %3 = vector.load %arg4[%c0_5, %c0_6] : memref<1x128xf32, #tpu.memory_space<vmem>>, vector<1x128xf32>
    %cst = arith.constant dense<0.000000e+00> : vector<8x128xf32>
    %4 = tpu.matmul %1, %2, %cst {dimension_numbers = #tpu.dot_dimension_numbers<[1], [0], [0], [1], [0, 0, 1, 1], [], []>} : vector<8x128xf32>, vector<128x128xf32>, vector<8x128xf32> -> vector<8x128xf32>
    %5 = vector.broadcast %3 : vector<1x128xf32> to vector<8x128xf32>
    %6 = arith.addf %4, %5 : vector<8x128xf32>
    %7 = arith.mulf %6, %6 : vector<8x128xf32>
    %cst_7 = arith.constant dense<0.000000e+00> : vector<8xf32>
    %8 = vector.multi_reduction <add>, %7, %cst_7 [1] : vector<8x128xf32> to vector<8xf32>
    %9 = vector.shape_cast %8 : vector<8xf32> to vector<8x1xf32>
    %10 = arith.mulf %6, %0 : vector<8x128xf32>
    %cst_8 = arith.constant dense<0.000000e+00> : vector<8xf32>
    %11 = vector.multi_reduction <add>, %10, %cst_8 [1] : vector<8x128xf32> to vector<8xf32>
    %12 = vector.shape_cast %11 : vector<8xf32> to vector<8x1xf32>
    %cst_9 = arith.constant 1.17549435E-38 : f32
    %13 = vector.broadcast %cst_9 : f32 to vector<8x1xf32>
    %14 = arith.maximumf %9, %13 : vector<8x1xf32>
    %cst_10 = arith.constant 2.000000e+00 : f32
    %15 = vector.broadcast %cst_10 : f32 to vector<8x1xf32>
    %16 = arith.mulf %15, %12 : vector<8x1xf32>
    %17 = tpu.reciprocal %14 : vector<8x1xf32> -> vector<8x1xf32>
    %18 = arith.mulf %16, %17 : vector<8x1xf32>
    %19 = vector.broadcast %18 : vector<8x1xf32> to vector<8x128xf32>
    %20 = arith.mulf %19, %6 : vector<8x128xf32>
    %21 = arith.subf %0, %20 : vector<8x128xf32>
    %c0_11 = arith.constant 0 : index
    %c0_12 = arith.constant 0 : index
    %22 = vector.load %arg5[%c0_11, %c0_12] : memref<8x128xf32, #tpu.memory_space<vmem>>, vector<8x128xf32>
    tpu.vector_store %arg5[%c0_11, %c0_12], %21 {strides = array<i32>} : memref<8x128xf32, #tpu.memory_space<vmem>>, vector<8x128xf32>,
    %c0_13 = arith.constant 0 : index
    %c0_14 = arith.constant 0 : index
    %23 = vector.load %arg6[%c0_13, %c0_14] : memref<8x128xf32, #tpu.memory_space<vmem>>, vector<8x128xf32>
    tpu.vector_store %arg6[%c0_13, %c0_14], %6 {strides = array<i32>} : memref<8x128xf32, #tpu.memory_space<vmem>>, vector<8x128xf32>,
    return
  }
  func.func @transform_0(%arg0: i32) -> (i32, i32) {
    %c0_i32 = arith.constant 0 : i32
    %c0_i32_0 = arith.constant 0 : i32
    return %arg0, %c0_i32 : i32, i32
  }
  func.func @transform_1(%arg0: i32) -> (i32, i32) {
    %c0_i32 = arith.constant 0 : i32
    %c0_i32_0 = arith.constant 0 : i32
    return %arg0, %c0_i32 : i32, i32
  }
  func.func @transform_2(%arg0: i32) -> (i32, i32) {
    %c0_i32 = arith.constant 0 : i32
    %c0_i32_0 = arith.constant 0 : i32
    %c0_i32_1 = arith.constant 0 : i32
    return %c0_i32, %c0_i32_0 : i32, i32
  }
  func.func @transform_3(%arg0: i32) -> (i32, i32) {
    %c0_i32 = arith.constant 0 : i32
    %c0_i32_0 = arith.constant 0 : i32
    %c0_i32_1 = arith.constant 0 : i32
    return %c0_i32, %c0_i32_0 : i32, i32
  }
  func.func @transform_4(%arg0: i32) -> (i32, i32) {
    %c0_i32 = arith.constant 0 : i32
    %c0_i32_0 = arith.constant 0 : i32
    return %arg0, %c0_i32 : i32, i32
  }
  func.func @transform_5(%arg0: i32) -> (i32, i32) {
    %c0_i32 = arith.constant 0 : i32
    %c0_i32_0 = arith.constant 0 : i32
    return %arg0, %c0_i32 : i32, i32
  }
}

</mosaic_0001>

<bundles_post_ra>
// kernel: tpu_custom_call.1
= control target key start
LH: loop header
LB: loop body
LE: loop exit
PB: predicated region body
PF: predicated region fallthrough
CT: control target
= control target key end

     0   :  { %11 = vsyncpa [#allocation3], 0  ;;  %s426_s0 = inlined_call_operand.hbm [shape: f32[8,128], index: 0, kind: input, shape index: {}]   ;;  %s427_s1 = inlined_call_operand.hbm [shape: f32[8,128], index: 1, kind: input, shape index: {}]   ;;  %s428_s2 = inlined_call_operand.hbm [shape: f32[128,128], index: 2, kind: input, shape index: {}]   ;;  %s429_s3 = inlined_call_operand.vmem [shape: f32[1,128], index: 3, kind: input, shape index: {}]   ;;  %s430_s4 = inlined_call_operand.hbm [shape: f32[8,128], index: 4, kind: output, shape index: {0}]   ;;  %s431_s5 = inlined_call_operand.hbm [shape: f32[8,128], index: 5, kind: output, shape index: {1}]  }
   0x1   :  { %12 = vsyncpa [#allocation6], 0 }
   0x2   :  { %13 = vsyncpa [#allocation4], 0 }
   0x3   :  { %14 = vsyncpa [#allocation10], 0  ;;  %s369_s18 = smov [#allocation5]   ;;  %s370_s20 = smov [#allocation2]  }
   0x4   :  { %s31_s19 = sshll.u32 %s369_s18, 4  ;;  %s21_s21 = sshll.u32 %s370_s20, 4  ;;  %s32_s19 = int_to_ptr.vmem [resolvable:$true] %s31_s19  ;;  %s22_s21 = int_to_ptr.vmem [resolvable:$true] %s21_s21 }
   0x5   :  { %s269_s22 = scalar_lea.vmem %s32_s19, 128  ;;  %p274_p1 = scmp.lt.s32.totalorder %s32_s19, %s32_s19 }
   0x6   :  { %p270_p0 = scmp.ne.s32.totalorder %s32_s19, %s269_s22  ;;  %p275_p2 = scmp.lt.s32.totalorder %s269_s22, %s269_s22 }
   0x8   :  { %p276_p3 = por %p275_p2, %p274_p1 }
   0xa   :  { %p277_p4 = pnand %p276_p3, %p270_p0 }
   0xc   :  { %280 = shalt.err (!%p277_p4)
}
   0xd   :  { %34 = dma.hbm_to_vmem [thread:$0]  %s427_s1, 128, %s32_s19, [#allocation6]  }
   0xe   :  { %s289_s25 = scalar_lea.vmem %s22_s21, 128  ;;  %p294_p6 = scmp.lt.s32.totalorder %s22_s21, %s22_s21 }
   0xf   :  { %p290_p5 = scmp.ne.s32.totalorder %s22_s21, %s289_s25  ;;  %p295_p7 = scmp.lt.s32.totalorder %s289_s25, %s289_s25 }
  0x11   :  { %p296_p8 = por %p295_p7, %p294_p6 }
  0x13   :  { %p297_p9 = pnand %p296_p8, %p290_p5 }
  0x15   :  { %300 = shalt.err (!%p297_p9)
}
  0x16   :  { %24 = dma.hbm_to_vmem [thread:$0]  %s426_s0, 128, %s22_s21, [#allocation3]  }
  0x17   :  { %s371_s28 = smov [#allocation7]  }
  0x18   :  { %s40_s29 = sshll.u32 %s371_s28, 4  ;;  %s41_s29 = int_to_ptr.vmem [resolvable:$true] %s40_s29 }
  0x19   :  { %s309_s30 = scalar_lea.vmem %s41_s29, 2048  ;;  %p314_p11 = scmp.lt.s32.totalorder %s41_s29, %s41_s29 }
  0x1a   :  { %p310_p10 = scmp.ne.s32.totalorder %s41_s29, %s309_s30  ;;  %p315_p12 = scmp.lt.s32.totalorder %s309_s30, %s309_s30 }
  0x1c   :  { %p316_p13 = por %p315_p12, %p314_p11 }
  0x1e   :  { %p317_p0 = pnand %p316_p13, %p310_p10 }
  0x20   :  { %320 = shalt.err (!%p317_p0)
}
  0x21   :  { %s372_s1 = smov 128   ;;  %s373_s6 = smov 8  }
  0x22   :  { %46 = dma.hbm_to_vmem [thread:$0]  %s428_s2, 2048, %s41_s29, [#allocation6], %s372_s1, %s372_s1, %s373_s6  }
  0x23   :  { %361 = dma.done.wait [#allocation3], 128  }
  0x24   :  { %362 = vsyncadd [#allocation3], 4294967168 }
  0x25   :  { %363 = dma.done.wait [#allocation6], 2176  }
  0x26   :  { %364 = vsyncadd [#allocation6], 4294965120  ;;  %v374_v0 = vmov 0.0   ;;  %vm375_vm0 = vmmov 0   ;;  %v75_v1 = vld [vmem:[#allocation7 + $0x78] sm:$0xff]  ;;  %v74_v2 = vld [vmem:[#allocation7 + $0x70] sm:$0xff] }
  0x27   :  { %215 = vmatprep.subr.mxu0 %v374_v0  ;;  %247 = vmatprep.mubr.msk.f32.mxu0 %vm375_vm0, %v374_v0  ;;  %v73_v3 = vld [vmem:[#allocation7 + $0x68] sm:$0xff]  ;;  %v72_v4 = vld [vmem:[#allocation7 + $0x60] sm:$0xff]  ;;  %v71_v5 = vld [vmem:[#allocation7 + $0x58] sm:$0xff]  ;;  %s376_s9 = smov [#allocation9]  }
  0x28   :  { %216 = vmatpush3.msra.mxu0 %v75_v1  ;;  %v70_v6 = vld [vmem:[#allocation7 + $0x50] sm:$0xff]  ;;  %v69_v7 = vld [vmem:[#allocation7 + $0x48] sm:$0xff]  ;;  %v68_v8 = vld [vmem:[#allocation7 + $0x40] sm:$0xff]  ;;  %s183_s10 = sshll.u32 %s376_s9, 4  ;;  %s184_s10 = int_to_ptr.vmem [resolvable:$true] %s183_s10 }
  0x29   :  { %217 = vmatprep.subr.mxu0 %v374_v0  ;;  %v67_v9 = vld [vmem:[#allocation7 + $0x38] sm:$0xff]  ;;  %v66_v10 = vld [vmem:[#allocation7 + $0x30] sm:$0xff]  ;;  %v65_v11 = vld [vmem:[#allocation7 + $0x28] sm:$0xff]  ;;  %s321_s11 = scalar_lea.vmem %s184_s10, 128  ;;  %p326_p2 = scmp.lt.s32.totalorder %s184_s10, %s184_s10 }
  0x2a   :  { %218 = vmatpush3.msra.mxu0 %v74_v2  ;;  %v64_v12 = vld [vmem:[#allocation7 + $0x20] sm:$0xff]  ;;  %v63_v13 = vld [vmem:[#allocation7 + $0x18] sm:$0xff]  ;;  %v62_v14 = vld [vmem:[#allocation7 + $0x10] sm:$0xff]  ;;  %p322_p1 = scmp.ne.s32.totalorder %s184_s10, %s321_s11  ;;  %p327_p3 = scmp.lt.s32.totalorder %s321_s11, %s321_s11 }
  0x2b   :  { %219 = vmatprep.subr.mxu0 %v374_v0  ;;  %v61_v15 = vld [vmem:[#allocation7 + $0x8] sm:$0xff]  ;;  %v60_v16 = vld [vmem:[#allocation7] sm:$0xff]  ;;  %v59_v17 = vld [vmem:[#allocation5] sm:$0xff] }
  0x2c   :  { %220 = vmatpush3.msra.mxu0 %v73_v3  ;;  %v197_v18 = vld [vmem:[%s429_s3] ss:$0 sm:$0xff]  ;;  %p328_p4 = por %p327_p3, %p326_p2 }
  0x2d   :  { %221 = vmatprep.subr.mxu0 %v374_v0  ;;  %v58_v23 = vld [vmem:[#allocation2] sm:$0xff] }
  0x2e   :  { %222 = vmatpush3.msra.mxu0 %v72_v4  ;;  %p329_p5 = pnand %p328_p4, %p322_p1 }
  0x2f   :  { %223 = vmatprep.subr.mxu0 %v374_v0 }
  0x30   :  { %224 = vmatpush3.msra.mxu0 %v71_v5 }
  0x31   :  { %225 = vmatprep.subr.mxu0 %v374_v0 }
  0x32   :  { %226 = vmatpush3.msra.mxu0 %v70_v6 }
  0x33   :  { %227 = vmatprep.subr.mxu0 %v374_v0 }
  0x34   :  { %228 = vmatpush3.msra.mxu0 %v69_v7 }
  0x35   :  { %229 = vmatprep.subr.mxu0 %v374_v0 }
  0x36   :  { %230 = vmatpush3.msra.mxu0 %v68_v8 }
  0x37   :  { %231 = vmatprep.subr.mxu0 %v374_v0 }
  0x38   :  { %232 = vmatpush3.msra.mxu0 %v67_v9 }
  0x39   :  { %233 = vmatprep.subr.mxu0 %v374_v0 }
  0x3a   :  { %234 = vmatpush3.msra.mxu0 %v66_v10 }
  0x3b   :  { %235 = vmatprep.subr.mxu0 %v374_v0 }
  0x3c   :  { %236 = vmatpush3.msra.mxu0 %v65_v11 }
  0x3d   :  { %237 = vmatprep.subr.mxu0 %v374_v0 }
  0x3e   :  { %238 = vmatpush3.msra.mxu0 %v64_v12 }
  0x3f   :  { %239 = vmatprep.subr.mxu0 %v374_v0 }
  0x40   :  { %240 = vmatpush3.msra.mxu0 %v63_v13 }
  0x41   :  { %241 = vmatprep.subr.mxu0 %v374_v0 }
  0x42   :  { %242 = vmatpush3.msra.mxu0 %v62_v14 }
  0x43   :  { %243 = vmatprep.subr.mxu0 %v374_v0 }
  0x44   :  { %244 = vmatpush3.msra.mxu0 %v61_v15 }
  0x45   :  { %245 = vmatprep.subr.mxu0 %v374_v0 }
  0x46   :  { %246 = vmatpush3.msra.mxu0 %v60_v16 }
  0x47   :  { %248 = vmatmul.mubr.f32.vlgmr.msra.gmra.mxu0 %v59_v17 }
 0x107   :  { %v149_v19 = vpop.f32.mrf.mxu0 }
 0x108   :  { %v150_v20 = vadd.f32 %v197_v18, %v149_v19 }
 0x109   :  { %v249_v21 = vpop.f32.mrf.mxu0 }
 0x10a   :  { %166 = vst [vmem:[#allocation9] sm:$0xff] %v150_v20  ;;  %v153_v22 = vmul.f32 %v150_v20, %v150_v20  ;;  %v156_v24 = vmul.f32 %v150_v20, %v58_v23 }
 0x10c   :  { %154 = vadd.xlane.f32.xlu0 %v153_v22 }
 0x110   :  { %157 = vadd.xlane.f32.xlu0 %v156_v24 }
 0x111   :  { %332 = shalt.err (!%p329_p5)
}
 0x112   :  { %186 = dma.vmem_to_hbm [thread:$0]  %s184_s10, 128, %s431_s5, [#allocation10]  }
 0x113   :  { %s377_s13 = smov [#allocation8]  }
 0x114   :  { %s173_s14 = sshll.u32 %s377_s13, 4  ;;  %s174_s14 = int_to_ptr.vmem [resolvable:$true] %s173_s14 }
 0x115   :  { %s341_s15 = scalar_lea.vmem %s174_s14, 128  ;;  %p346_p7 = scmp.lt.s32.totalorder %s174_s14, %s174_s14 }
 0x116   :  { %p342_p6 = scmp.ne.s32.totalorder %s174_s14, %s341_s15  ;;  %p347_p8 = scmp.lt.s32.totalorder %s341_s15, %s341_s15 }
 0x118   :  { %p348_p9 = por %p347_p8, %p346_p7 }
 0x11a   :  { %p349_p10 = pnand %p348_p9, %p342_p6 }
 0x195   :  { %v155_v25 = vpop.xlane.xlu0 %154 }
 0x196   :  { %v159_v26 = vmax.f32 %v155_v25, 1.1754944e-38 }
 0x198   :  { %259 = vrcp.f32 %v159_v26 }
 0x199   :  { %v158_v27 = vpop.xlane.xlu0 %157 }
 0x19a   :  { %v160_v28 = vmul.f32 2.0, %v158_v27 }
 0x1a5   :  { %v260_v29 = vpop.eup %259 }
 0x1a6   :  { %v162_v30 = vmul.f32 %v260_v29, %v160_v28 }
 0x1a8   :  { %v163_v31 = vmul.f32 %v162_v30, %v150_v20 }
 0x1aa   :  { %v164_v32 = vsub.f32 %v58_v23, %v163_v31 }
 0x1ac   :  { %165 = vst [vmem:[#allocation8] sm:$0xff] %v164_v32 }
 0x1ad   :  { %352 = shalt.err (!%p349_p10)
}
 0x1ae   :  { %176 = dma.vmem_to_hbm [thread:$0]  %s174_s14, 128, %s430_s4, [#allocation4]  }
 0x1af   :  { %365 = dma.done.wait [#allocation4], 128  }
 0x1b0   :  { %366 = vsyncadd [#allocation4], 4294967168 }
 0x1b1   :  { %367 = dma.done.wait [#allocation10], 128  }
 0x1b2   :  { %368 = vsyncadd [#allocation10], 4294967168 }
 0x1b3   :  { %193 = vsyncpa [#allocation3], 1 }
 0x1b4   :  { %194 = vsyncpa [#allocation6], 1 }
 0x1b5   :  { %195 = vsyncpa [#allocation4], 1 }
 0x1b6   :  { %196 = vsyncpa [#allocation10], 1 }

</bundles_post_ra>
